<compile_context>
chip_gen: v7x
topology: tpu7x:2x2x1
jax: 0.10.0
libtpu: 0.0.40
codegen_flags: <defaults>
</compile_context>

<pallas_src>
import functools

import jax
import jax.numpy as jnp
from jax.experimental import pallas as pl
from jax.experimental.pallas import tpu as pltpu


def _sgc_kernel(xt_ref, wgk_ref, w2h_ref, wf_ref, bf_ref, out_ref):
    xt = xt_ref[...]                                                   # (D, T) stream dtype
    xf = xt.astype(jnp.float32)

    # x . w_k for every center: (K, T), lane-dense, on the MXU.
    xw = jnp.dot(wgk_ref[...], xt, preferred_element_type=jnp.float32)

    # 0.5*||x||^2 per sample, folded onto the (otherwise idle) MXU as a ones-row matmul,
    # kept in f32 to avoid amplifying cancellation in the expanded distance.
    ones_row = jnp.ones((1, xf.shape[0]), jnp.float32)
    x2h = 0.5 * jnp.dot(ones_row, xf * xf, preferred_element_type=jnp.float32)  # (1, T)

    # -0.5*||x - w_k||^2 = x.w_k - 0.5||x||^2 - 0.5||w_k||^2 ; clamp at 0 (sqdist >= 0)
    # guards against cancellation making the argument slightly positive.
    arg = jnp.minimum(xw - x2h + w2h_ref[...], 0.0)                    # (K, T)
    gk = jnp.exp(arg)                                                  # (K, T) f32, full-lane EUP

    # Fused embedding+classifier linear (the Gauss bias is already folded into b_f).
    out = jnp.dot(wf_ref[...], gk, preferred_element_type=jnp.float32) + bf_ref[...]  # (O, T)
    out_ref[...] = out.astype(out_ref.dtype)


def _round_up(v, m):
    return ((v + m - 1) // m) * m


def _cdiv(a, b):
    return -(-a // b)


@functools.partial(jax.jit, static_argnames=("tile_n", "stream_dtype", "out_dtype"))
def spatial_graph_classifier(x, params, *, tile_n=16384,
                             stream_dtype=jnp.bfloat16, out_dtype=None):
    """x: (N, input_dim) float32. params: dict of weights/biases (see init_params)."""
    wgk, gk_b = params["gk_w"], params["gk_b"]      # (K, D), (1, K)
    emb_w, emb_b = params["emb_w"], params["emb_b"]  # (E, K), (1, E)
    cls_w, cls_b = params["cls_w"], params["cls_b"]  # (O, E), (1, O)

    n, d = x.shape
    k = wgk.shape[0]
    o = cls_w.shape[0]
    out_dtype = x.dtype if out_dtype is None else out_dtype

    # ---- loop-invariant precompute (runs once in the wrapper, not per grid step) ----
    w_f = (cls_w @ emb_w).astype(jnp.float32)                              # (O, K)
    b_f = (gk_b @ w_f.T + emb_b @ cls_w.T + cls_b).astype(jnp.float32)     # (1, O)
    b_f_col = b_f.T                                                        # (O, 1)

    wgk_s = wgk.astype(stream_dtype)                                       # (K, D) rounded like x
    wgk_f = wgk_s.astype(jnp.float32)
    w2h = -0.5 * jnp.sum(wgk_f * wgk_f, axis=-1, keepdims=True)            # (K, 1) f32

    # ---- per-call tile selection (lane = batch axis) ----
    LANE = 128
    stream_bytes = jnp.dtype(stream_dtype).itemsize
    out_bytes = jnp.dtype(out_dtype).itemsize
    # per-lane-column VMEM: double-buffered x^T / out blocks + f32 intermediates (xw, x^2,
    # arg, gk, casts); generous so we never hit the scoped VMEM limit.
    per_lane = 2 * d * stream_bytes + 2 * max(o, 8) * out_bytes + 6 * max(k, 8) * 4 + 32
    vmem_budget = 40 * 1024 * 1024
    tile_cap = max(LANE, (vmem_budget // per_lane) // LANE * LANE)
    tile_req = min(int(tile_n), tile_cap)

    steps = max(1, _cdiv(n, tile_req))
    if steps == 1 and n > LANE:
        steps = 2                       # >= 2 grid steps -> both v7x TensorCores are used
    tile = max(LANE, min(tile_req, _round_up(_cdiv(n, steps), LANE)))
    grid_steps = _cdiv(n, tile)
    n_pad = grid_steps * tile

    # ---- lane-dense activation stream: batch on the 128-lane axis ----
    x_t = x.T.astype(stream_dtype)                                         # (D, N)
    if n_pad != n:
        x_t = jnp.pad(x_t, ((0, 0), (0, n_pad - n)))

    rep = lambda i: (0, 0)  # weights replicated across batch tiles
    out_t = pl.pallas_call(
        _sgc_kernel,
        out_shape=jax.ShapeDtypeStruct((o, n_pad), out_dtype),
        grid_spec=pltpu.PrefetchScalarGridSpec(
            num_scalar_prefetch=0,
            grid=(grid_steps,),
            in_specs=[
                pl.BlockSpec((d, tile), lambda i: (0, i)),   # x^T tile (lane-dense stream)
                pl.BlockSpec((k, d), rep),                   # Gauss centers (K, D)
                pl.BlockSpec((k, 1), rep),                   # -0.5*||w||^2
                pl.BlockSpec((o, k), rep),                   # fused linear W_f
                pl.BlockSpec((o, 1), rep),                   # fused bias b_f (column)
            ],
            out_specs=pl.BlockSpec((o, tile), lambda i: (0, i)),  # (O, T): full-lane stores
        ),
        compiler_params=pltpu.CompilerParams(
            dimension_semantics=("parallel",),
            vmem_limit_bytes=48 * 1024 * 1024,
        ),
    )(x_t, wgk_s, w2h, w_f, b_f_col)

    # (O, N) -> (N, O); tiny compared with the input stream.
    return out_t[:, :n].T


def init_params(key, input_dim, output_dim, gauss_kernel_dim, embedding_dim):
    # NOTE: the original PyTorch broadcasting requires input_dim == gauss_kernel_dim.
    assert input_dim == gauss_kernel_dim, (
        "GaussKernelLayer broadcasting only type-checks when input_dim == gauss_kernel_dim"
    )
    ks = jax.random.split(key, 6)
    # GaussKernelLayer: torch.randn(input_dim, gauss_kernel_dim), kept centers-first.
    gk_w = jax.random.normal(ks[0], (gauss_kernel_dim, input_dim), jnp.float32)
    gk_b = jax.random.normal(ks[1], (1, gauss_kernel_dim), jnp.float32)
    # nn.Linear params (out_features, in_features); deterministic synthetic init.
    emb_w = jax.random.normal(ks[2], (embedding_dim, gauss_kernel_dim), jnp.float32) * 0.1
    emb_b = jax.random.normal(ks[3], (1, embedding_dim), jnp.float32) * 0.1
    cls_w = jax.random.normal(ks[4], (output_dim, embedding_dim), jnp.float32) * 0.1
    cls_b = jax.random.normal(ks[5], (1, output_dim), jnp.float32) * 0.1
    return dict(gk_w=gk_w, gk_b=gk_b, emb_w=emb_w, emb_b=emb_b, cls_w=cls_w, cls_b=cls_b)


def reference_forward(x, params):
    """Pure-JAX f32 reference mirroring the PyTorch module literally."""
    wgk = params["gk_w"]                       # (K, D), row k = center k
    diff = x[:, None, :] - wgk[None, :, :]     # (N, K, D)
    gk = jnp.exp(-jnp.sum(diff * diff, axis=2) / 2.0) + params["gk_b"][0]
    emb = gk @ params["emb_w"].T + params["emb_b"][0]
    return emb @ params["cls_w"].T + params["cls_b"][0]


if __name__ == "__main__":
    input_dim = 32
    gauss_kernel_dim = 32   # must equal input_dim (see note in init_params)
    embedding_dim = 32
    output_dim = 8

    key = jax.random.PRNGKey(0)
    k_x, k_x2, k_p = jax.random.split(key, 3)
    params = init_params(k_p, input_dim, output_dim, gauss_kernel_dim, embedding_dim)
    # Scale data & centers so the Gauss kernel is numerically exercised: with pure randn
    # at D=32, sqdist ~ 2D and gk ~ exp(-32) ~ 0, which would not test the exp path.
    params = dict(params, gk_w=params["gk_w"] * 0.3)

    # Small batch: single grid step, batch padding to one 128-lane tile.
    x = 0.3 * jax.random.normal(k_x, (16, input_dim), jnp.float32)
    out = jax.block_until_ready(spatial_graph_classifier(x, params))
    ref = reference_forward(x, params)
    assert out.shape == (16, output_dim)
    assert jnp.allclose(out, ref, atol=1e-3, rtol=1e-3), "mismatch vs reference (small batch)"

    # Larger batch: exercises the multi-step grid (>=2 steps for v7x megacore) + padding.
    x2 = 0.3 * jax.random.normal(k_x2, (384, input_dim), jnp.float32)
    out2 = jax.block_until_ready(spatial_graph_classifier(x2, params))
    ref2 = reference_forward(x2, params)
    assert out2.shape == (384, output_dim)
    assert jnp.allclose(out2, ref2, atol=1e-3, rtol=1e-3), "mismatch vs reference (large batch)"

    print("KERNEL_OK")
</pallas_src>

<mosaic_0001>
module attributes {stable_mosaic.version = 11 : i64} {
  func.func @_sgc_kernel(%arg0: i32, %arg1: memref<32x128xbf16, #tpu.memory_space<vmem>>, %arg2: memref<32x32xbf16, #tpu.memory_space<vmem>>, %arg3: memref<32x1xf32, #tpu.memory_space<vmem>>, %arg4: memref<8x32xf32, #tpu.memory_space<vmem>>, %arg5: memref<8x1xf32, #tpu.memory_space<vmem>>, %arg6: memref<8x128xf32, #tpu.memory_space<vmem>>) attributes {dimension_semantics = [#tpu.dimension_semantics<parallel>], iteration_bounds = array<i64: 1>, scalar_prefetch = 0 : i64, scratch_operands = 0 : i64, tpu.core_type = #tpu.core_type<tc>, window_params = [{transform_indices = @transform_0, window_bounds = array<i64: 32, 128>}, {pipeline_mode = #tpu.pipeline_mode<synchronous>, transform_indices = @transform_1, window_bounds = array<i64: 32, 32>}, {pipeline_mode = #tpu.pipeline_mode<synchronous>, transform_indices = @transform_2, window_bounds = array<i64: 32, 1>}, {pipeline_mode = #tpu.pipeline_mode<synchronous>, transform_indices = @transform_3, window_bounds = array<i64: 8, 32>}, {pipeline_mode = #tpu.pipeline_mode<synchronous>, transform_indices = @transform_4, window_bounds = array<i64: 8, 1>}, {transform_indices = @transform_5, window_bounds = array<i64: 8, 128>}]} {
    %c0 = arith.constant 0 : index
    %c0_0 = arith.constant 0 : index
    %0 = vector.load %arg1[%c0, %c0_0] : memref<32x128xbf16, #tpu.memory_space<vmem>>, vector<32x128xbf16>
    %1 = arith.extf %0 : vector<32x128xbf16> to vector<32x128xf32>
    %c0_1 = arith.constant 0 : index
    %c0_2 = arith.constant 0 : index
    %2 = vector.load %arg2[%c0_1, %c0_2] : memref<32x32xbf16, #tpu.memory_space<vmem>>, vector<32x32xbf16>
    %cst = arith.constant dense<0.000000e+00> : vector<32x128xf32>
    %3 = tpu.matmul %2, %0, %cst {dimension_numbers = #tpu.dot_dimension_numbers<[1], [0], [0], [1], [0, 0, 1, 1], [], []>} : vector<32x32xbf16>, vector<32x128xbf16>, vector<32x128xf32> -> vector<32x128xf32>
    %cst_3 = arith.constant 1.000000e+00 : f32
    %4 = vector.broadcast %cst_3 : f32 to vector<1x32xf32>
    %5 = arith.mulf %1, %1 : vector<32x128xf32>
    %cst_4 = arith.constant dense<0.000000e+00> : vector<1x128xf32>
    %6 = tpu.matmul %4, %5, %cst_4 {dimension_numbers = #tpu.dot_dimension_numbers<[1], [0], [0], [1], [0, 0, 1, 1], [], []>} : vector<1x32xf32>, vector<32x128xf32>, vector<1x128xf32> -> vector<1x128xf32>
    %cst_5 = arith.constant 5.000000e-01 : f32
    %7 = vector.broadcast %cst_5 : f32 to vector<1x128xf32>
    %8 = arith.mulf %7, %6 : vector<1x128xf32>
    %9 = vector.broadcast %8 : vector<1x128xf32> to vector<32x128xf32>
    %10 = arith.subf %3, %9 : vector<32x128xf32>
    %c0_6 = arith.constant 0 : index
    %c0_7 = arith.constant 0 : index
    %11 = vector.load %arg3[%c0_6, %c0_7] : memref<32x1xf32, #tpu.memory_space<vmem>>, vector<32x1xf32>
    %12 = vector.broadcast %11 : vector<32x1xf32> to vector<32x128xf32>
    %13 = arith.addf %10, %12 : vector<32x128xf32>
    %cst_8 = arith.constant 0.000000e+00 : f32
    %14 = vector.broadcast %cst_8 : f32 to vector<32x128xf32>
    %15 = arith.minimumf %13, %14 : vector<32x128xf32>
    %16 = math.exp %15 : vector<32x128xf32>
    %c0_9 = arith.constant 0 : index
    %c0_10 = arith.constant 0 : index
    %17 = vector.load %arg4[%c0_9, %c0_10] : memref<8x32xf32, #tpu.memory_space<vmem>>, vector<8x32xf32>
    %cst_11 = arith.constant dense<0.000000e+00> : vector<8x128xf32>
    %18 = tpu.matmul %17, %16, %cst_11 {dimension_numbers = #tpu.dot_dimension_numbers<[1], [0], [0], [1], [0, 0, 1, 1], [], []>} : vector<8x32xf32>, vector<32x128xf32>, vector<8x128xf32> -> vector<8x128xf32>
    %c0_12 = arith.constant 0 : index
    %c0_13 = arith.constant 0 : index
    %19 = vector.load %arg5[%c0_12, %c0_13] : memref<8x1xf32, #tpu.memory_space<vmem>>, vector<8x1xf32>
    %20 = vector.broadcast %19 : vector<8x1xf32> to vector<8x128xf32>
    %21 = arith.addf %18, %20 : vector<8x128xf32>
    %c0_14 = arith.constant 0 : index
    %c0_15 = arith.constant 0 : index
    %22 = vector.load %arg6[%c0_14, %c0_15] : memref<8x128xf32, #tpu.memory_space<vmem>>, vector<8x128xf32>
    tpu.vector_store %arg6[%c0_14, %c0_15], %21 {strides = array<i32>} : memref<8x128xf32, #tpu.memory_space<vmem>>, vector<8x128xf32>,
    return
  }
  func.func @transform_0(%arg0: i32) -> (i32, i32) {
    %c0_i32 = arith.constant 0 : i32
    %c0_i32_0 = arith.constant 0 : i32
    return %c0_i32, %arg0 : i32, i32
  }
  func.func @transform_1(%arg0: i32) -> (i32, i32) {
    %c0_i32 = arith.constant 0 : i32
    %c0_i32_0 = arith.constant 0 : i32
    %c0_i32_1 = arith.constant 0 : i32
    return %c0_i32, %c0_i32_0 : i32, i32
  }
  func.func @transform_2(%arg0: i32) -> (i32, i32) {
    %c0_i32 = arith.constant 0 : i32
    %c0_i32_0 = arith.constant 0 : i32
    %c0_i32_1 = arith.constant 0 : i32
    return %c0_i32, %c0_i32_0 : i32, i32
  }
  func.func @transform_3(%arg0: i32) -> (i32, i32) {
    %c0_i32 = arith.constant 0 : i32
    %c0_i32_0 = arith.constant 0 : i32
    %c0_i32_1 = arith.constant 0 : i32
    return %c0_i32, %c0_i32_0 : i32, i32
  }
  func.func @transform_4(%arg0: i32) -> (i32, i32) {
    %c0_i32 = arith.constant 0 : i32
    %c0_i32_0 = arith.constant 0 : i32
    %c0_i32_1 = arith.constant 0 : i32
    return %c0_i32, %c0_i32_0 : i32, i32
  }
  func.func @transform_5(%arg0: i32) -> (i32, i32) {
    %c0_i32 = arith.constant 0 : i32
    %c0_i32_0 = arith.constant 0 : i32
    return %c0_i32, %arg0 : i32, i32
  }
}

</mosaic_0001>

<bundles_post_ra>
// kernel: spatial_graph_classifier.1
= control target key start
LH: loop header
LB: loop body
LE: loop exit
PB: predicated region body
PF: predicated region fallthrough
CT: control target
= control target key end

     0   :  { %v407_v1 = vmov 0.0|0.0   ;;  %vm55_vm0 = vcmask 261120   ;;  %vm408_vm1 = vmmov 0   ;;  %v409_v3 = vmov 0.0   ;;  %s485_s0 = inlined_call_operand.vmem [shape: bf16[32,128], index: 0, kind: input, shape index: {}]   ;;  %s486_s1 = inlined_call_operand.vmem [shape: bf16[32,32], index: 1, kind: input, shape index: {}]   ;;  %s487_s2 = inlined_call_operand.vmem [shape: f32[32,1], index: 2, kind: input, shape index: {}]   ;;  %s488_s4 = inlined_call_operand.vmem [shape: f32[8,1], index: 4, kind: input, shape index: {}]   ;;  %s489_s3 = inlined_call_operand.vmem [shape: f32[8,32], index: 3, kind: input, shape index: {}]   ;;  %s490_s5 = inlined_call_operand.vmem [shape: f32[8,128], index: 5, kind: output, shape index: {}]  }
   0x1   :  { %v21_v0 = vld [vmem:[%s485_s0] sm:$0xff]   ;;  %374 = vmatprep.subr.bf16.mxu1 %v407_v1  ;;  %v23_v2 = vld [vmem:[%s485_s0 + $0x8] sm:$0xff]   ;;  %360 = vmatprep.mubr.msk.f32.mxu1 %vm408_vm1, %v409_v3  ;;  %v410_v8 = vmov 0   ;;  %v199_v14 = vld [vmem:[%s487_s2 + $0x10] sm:$0xff]  ;;  %v411_v22 = vmov 1.0   ;;  %v189_v23 = vlaneseq }
   0x2   :  { %v25_v4 = vunpack.c.l.bf16 %v21_v0  ;;  %v26_v5 = vunpack.c.h.bf16 %v21_v0  ;;  %v27_v6 = vunpack.c.l.bf16 %v23_v2  ;;  %v395_v7 = vld [vmem:[%s486_s1] sm:$0xff]   ;;  %391 = vset.pattern.permute.xlu0 %v410_v8  ;;  %392 = vset.pattern.permute.xlu1 %v410_v8  ;;  %v28_v9 = vunpack.c.h.bf16 %v23_v2  ;;  %v198_v17 = vld [vmem:[%s487_s2 + $0x8] sm:$0xff]  ;;  %v200_v18 = vld [vmem:[%s487_s2 + $0x18] sm:$0xff] }
   0x3   :  { %v197_v10 = vld [vmem:[%s487_s2] sm:$0xff]  ;;  %344 = vmatprep.subr.bf16.mxu0 %v21_v0  ;;  %348 = vmatprep.mubr.msk.bf16.mxu0 %vm55_vm0, %v395_v7  ;;  %v396_v20 = vld [vmem:[%s486_s1 + $0x8] sm:$0xff]   ;;  %v190_v24 = vshrl.u32 %v189_v23, 7 }
   0x4   :  { %v111_v11 = vmul.f32 %v25_v4, %v25_v4  ;;  %v112_v12 = vmul.f32 %v26_v5, %v26_v5  ;;  %v113_v13 = vmul.f32 %v27_v6, %v27_v6  ;;  %345 = vmatpush3.bf16.msra.mxu0 %v21_v0  ;;  %v114_v15 = vmul.f32 %v28_v9, %v28_v9  ;;  %v238_v21 = vld [vmem:[%s488_s4] sm:$0xff] }
   0x5   :  { %203 = vperm.xlu0 %391, %v197_v10   ;;  %346 = vmatprep.subr.bf16.mxu0 %v23_v2  ;;  %v191_v30 = vsub.s32 0, %v190_v24  ;;  %v237_v60 = vld [vmem:[%s489_s3] sm:$0xff] }
   0x6   :  { %v375_v16 = vpack.c.bf16 %v112_v12, %v111_v11  ;;  %213 = vperm.xlu1 %392, %v199_v14   ;;  %v378_v19 = vpack.c.bf16 %v114_v15, %v113_v13 }
   0x8   :  { %376 = vmatpush3.bf16.msra.mxu1 %v375_v16  ;;  %347 = vmatpush3.bf16.msra.mxu0 %v23_v2 }
   0x9   :  { %377 = vmatprep.subr.bf16.mxu1 %v407_v1  ;;  %208 = vperm.xlu0 %391, %v198_v17  }
   0xa   :  { %218 = vperm.xlu1 %392, %v200_v18   ;;  %380 = vmatprep.subr.bf16.mxu0 %v407_v1 }
   0xb   :  { %349 = vmatmul.mubr.msk.bf16.vlgmr.msra.gmra.mrb[0].mxu0 %vm55_vm0, %v396_v20 }
   0xc   :  { %379 = vmatpush3.bf16.msra.mxu1 %v378_v19  ;;  %371 = vmatprep.mubr.msk.f32.mxu0 %vm408_vm1, %v409_v3 }
   0xd   :  { %241 = vperm.xlu0 %391, %v238_v21  }
   0xf   :  { %361 = vmatmul.mubr.msk.f32.vlgmr.msra.gmra.mrb[0].mxu1 %vm55_vm0, %v411_v22 }
  0x84   :  { %v204_v28 = vpop.permute.xlu0 %203 }
  0x85   :  { %v214_v27 = vpop.permute.xlu1 %213 }
  0x88   :  { %v209_v41 = vpop.permute.xlu0 %208 }
  0x89   :  { %v219_v36 = vpop.permute.xlu1 %218 }
  0x8c   :  { %v242_v61 = vpop.permute.xlu0 %241 }
  0xde   :  { %v350_v25 = vpop.f32.mrb[0].mxu0 }
  0xdf   :  { %v96_v26 = vpop.f32.mrb[1].mxu0 }
  0xe0   :  { %v351_v29 = vpop.f32.mrb[2].mxu0 }
  0xe1   :  { %v99_v32 = vpop.f32.mrb[3].mxu0 }
  0xe2   :  { %v184_v31 = vpop.f32.mrb[0].mxu1 }
  0xe3   :  { %v188_v33 = vmul.f32 0.5, %v184_v31  ;;  %v362_v34 = vpop.f32.mrb[1].mxu1 }
  0xe5   :  { %v192_v35 = vrot.slane %v188_v33, %v191_v30 }
  0xe7   :  { %v193_v37 = vsub.f32 %v96_v26, %v192_v35  ;;  %v194_v38 = vsub.f32 %v99_v32, %v192_v35  ;;  %v195_v39 = vsub.f32 %v350_v25, %v192_v35  ;;  %v196_v40 = vsub.f32 %v351_v29, %v192_v35 }
  0xe9   :  { %v221_v42 = vadd.f32 %v204_v28, %v193_v37  ;;  %v222_v43 = vadd.f32 %v209_v41, %v194_v38  ;;  %v223_v44 = vadd.f32 %v214_v27, %v195_v39  ;;  %v224_v45 = vadd.f32 %v219_v36, %v196_v40 }
  0xeb   :  { %v225_v46 = vmin.f32 %v221_v42, 0.0  ;;  %v226_v47 = vmin.f32 %v222_v43, 0.0  ;;  %v227_v48 = vmin.f32 %v223_v44, 0.0  ;;  %v228_v49 = vmin.f32 %v224_v45, 0.0 }
  0xed   :  { %v229_v50 = vmul.f32 1.442695, %v225_v46  ;;  %v231_v51 = vmul.f32 1.442695, %v226_v47  ;;  %v233_v52 = vmul.f32 1.442695, %v227_v48 }
  0xee   :  { %v235_v53 = vmul.f32 1.442695, %v228_v49 }
  0xef   :  { %399 = vpow2.f32 %v229_v50 }
  0xf0   :  { %401 = vpow2.f32 %v231_v51 }
  0xf1   :  { %403 = vpow2.f32 %v233_v52 }
  0xf2   :  { %405 = vpow2.f32 %v235_v53 }
  0xf9   :  { %v400_v54 = vpop.eup %399 }
  0xfa   :  { %v402_v55 = vpop.eup %401 }
  0xfb   :  { %v404_v56 = vpop.eup %403  ;;  %v381_v57 = vpack.c.bf16 %v402_v55, %v400_v54 }
  0xfc   :  { %v406_v58 = vpop.eup %405 }
  0xfd   :  { %382 = vmatpush3.bf16.msra.mxu0 %v381_v57  ;;  %v384_v59 = vpack.c.bf16 %v406_v58, %v404_v56 }
  0xfe   :  { %383 = vmatprep.subr.bf16.mxu0 %v407_v1 }
 0x101   :  { %385 = vmatpush3.bf16.msra.mxu0 %v384_v59 }
 0x104   :  { %372 = vmatmul.mubr.msk.f32.vlgmr.msra.gmra.mrb[4].mxu0 %vm55_vm0, %v237_v60 }
 0x1d7   :  { %v313_v62 = vpop.f32.mrb[4].mxu0 }
 0x1d8   :  { %v314_v63 = vadd.f32 %v313_v62, %v242_v61  ;;  %v373_v0 = vpop.f32.mrb[5].mxu0 }
 0x1da   :  { %317 = vst [vmem:[%s490_s5] sm:$0xff] %v314_v63 }

</bundles_post_ra>
